<compile_context>
chip_gen: v5e
topology: v5e:2x2
jax: 0.10.0
libtpu: 0.0.40
codegen_flags: <defaults>
</compile_context>

<pallas_src>
import functools

import jax
import jax.numpy as jnp
from jax.experimental import pallas as pl
from jax.experimental.pallas import tpu as pltpu


def _round_up(a, b):
    return (a + b - 1) // b * b


def amsoftmax_kernel(x_ref, w_ref, lb_ref, out_ref,
                     m_sc, l_sc, zt_sc, *, m, s, n_classes, tc):
    ci = pl.program_id(1)
    nc = pl.num_programs(1)

    @pl.when(ci == 0)
    def _init():
        m_sc[...] = jnp.full_like(m_sc, -jnp.inf)
        l_sc[...] = jnp.zeros_like(l_sc)
        zt_sc[...] = jnp.zeros_like(zt_sc)

    x = x_ref[...]                      # (TB, D)  native dtype
    w = w_ref[...]                      # (D, TC)  native dtype
    lb = lb_ref[...]                    # (TB, 1)  int32

    # Raw dot on the MXU in the operands' native dtype, f32 accumulation.
    raw = jnp.dot(x, w, preferred_element_type=jnp.float32)          # (TB, TC)

    # Fold both L2 normalizations into post-matmul scaling (rsqrt -> EUP).
    xf = x.astype(jnp.float32)
    wf = w.astype(jnp.float32)
    inv_x = jax.lax.rsqrt(
        jnp.maximum(jnp.sum(xf * xf, axis=1, keepdims=True), 1e-24))  # (TB, 1)
    inv_w = jax.lax.rsqrt(
        jnp.maximum(jnp.sum(wf * wf, axis=0, keepdims=True), 1e-24))  # (1, TC)
    costh = raw * inv_x * inv_w                                       # (TB, TC)

    # Global class index of each lane in this C tile.
    col = ci * tc + jax.lax.broadcasted_iota(jnp.int32, costh.shape, 1)
    is_true = col == lb                 # one-hot of the label (at most 1/row/tile)
    valid = col < n_classes             # mask for lane padding of C

    # Margin + scale in one select; padded classes -> -inf (excluded from lse).
    logits = jnp.where(is_true, costh - m, costh) * s
    logits = jnp.where(valid, logits, -jnp.inf)

    # True-class logit: its column lives in exactly one C tile, so sum-accumulate.
    zt_sc[...] += jnp.sum(jnp.where(is_true, logits, 0.0), axis=1, keepdims=True)

    # Online (streaming) logsumexp over the C tiles.
    tile_max = jnp.max(logits, axis=1, keepdims=True)
    m_new = jnp.maximum(m_sc[...], tile_max)
    l_sc[...] = (l_sc[...] * jnp.exp(m_sc[...] - m_new)
                 + jnp.sum(jnp.exp(logits - m_new), axis=1, keepdims=True))
    m_sc[...] = m_new

    @pl.when(ci == nc - 1)
    def _finalize():
        # per-row cross-entropy: logsumexp(logits) - logit[label]
        out_ref[...] = (m_sc[...] + jnp.log(l_sc[...])) - zt_sc[...]


def amsoftmax_loss(x, W, labels, *, m=0.3, s=15.0, tb=128, tc=512):
    """Mean AM-Softmax cross-entropy loss, matching the PyTorch forward."""
    B, D = x.shape
    D2, C = W.shape
    assert D == D2 and labels.shape[0] == B

    # Tile sizes: lane axis (classes) multiple of 128, sublane (batch) multiple of 8.
    TB = min(tb, _round_up(B, 8))
    TC = min(tc, _round_up(C, 128))
    B_pad = _round_up(B, TB)
    C_pad = _round_up(C, TC)

    xp = x if B_pad == B else jnp.pad(x, ((0, B_pad - B), (0, 0)))
    Wp = W if C_pad == C else jnp.pad(W, ((0, 0), (0, C_pad - C)))
    lb2d = labels.reshape(B, 1).astype(jnp.int32)
    lbp = lb2d if B_pad == B else jnp.pad(lb2d, ((0, B_pad - B), (0, 0)))

    nb, nc = B_pad // TB, C_pad // TC

    kernel = functools.partial(
        amsoftmax_kernel, m=float(m), s=float(s), n_classes=C, tc=TC)

    per_row = pl.pallas_call(
        kernel,
        out_shape=jax.ShapeDtypeStruct((B_pad, 1), jnp.float32),
        grid_spec=pltpu.PrefetchScalarGridSpec(
            num_scalar_prefetch=0,
            grid=(nb, nc),
            in_specs=[
                pl.BlockSpec((TB, D), lambda bi, ci: (bi, 0)),   # x tile
                pl.BlockSpec((D, TC), lambda bi, ci: (0, ci)),   # W tile (streams over C)
                pl.BlockSpec((TB, 1), lambda bi, ci: (bi, 0)),   # labels tile
            ],
            out_specs=pl.BlockSpec((TB, 1), lambda bi, ci: (bi, 0)),
            scratch_shapes=[
                pltpu.VMEM((TB, 1), jnp.float32),   # running max
                pltpu.VMEM((TB, 1), jnp.float32),   # running exp-sum
                pltpu.VMEM((TB, 1), jnp.float32),   # true-class logit
            ],
        ),
        compiler_params=pltpu.CompilerParams(
            dimension_semantics=("parallel", "arbitrary")),
    )(xp, Wp, lbp)

    # Mean over the valid (unpadded) batch rows; tiny wrapper-side reduction.
    return jnp.mean(per_row[:B, 0])


def amsoftmax_loss_ref(x, W, labels, *, m=0.3, s=15.0):
    # Pure-JAX reference mirroring the PyTorch forward.
    xn = x / jnp.maximum(jnp.linalg.norm(x, axis=1, keepdims=True), 1e-12)
    wn = W / jnp.maximum(jnp.linalg.norm(W, axis=0, keepdims=True), 1e-12)
    costh = xn @ wn
    onehot = jax.nn.one_hot(labels, W.shape[1], dtype=costh.dtype)
    logits = s * (costh - m * onehot)
    logz = jax.scipy.special.logsumexp(logits, axis=1)
    return jnp.mean(logz - jnp.sum(logits * onehot, axis=1))


if __name__ == "__main__":
    in_feats, n_classes, batch = 32, 10, 8
    m, s = 0.3, 15.0

    key = jax.random.PRNGKey(0)
    kx, kw, kl = jax.random.split(key, 3)

    x = jax.random.normal(kx, (batch, in_feats), dtype=jnp.float32)
    labels = jax.random.randint(kl, (batch,), 0, n_classes, dtype=jnp.int32)

    # Xavier-normal init for W (gain=1): std = sqrt(2 / (fan_in + fan_out)).
    std = (2.0 / (in_feats + n_classes)) ** 0.5
    W = std * jax.random.normal(kw, (in_feats, n_classes), dtype=jnp.float32)

    loss = amsoftmax_loss(x, W, labels, m=m, s=s)
    jax.block_until_ready(loss)

    ref = amsoftmax_loss_ref(x, W, labels, m=m, s=s)
    assert jnp.allclose(loss, ref, rtol=1e-5, atol=1e-5), (loss, ref)

    print("KERNEL_OK")
</pallas_src>

<mosaic_0001>
module attributes {stable_mosaic.version = 11 : i64} {
  func.func @amsoftmax_kernel(%arg0: i32, %arg1: i32, %arg2: memref<8x32xf32, #tpu.memory_space<vmem>>, %arg3: memref<32x128xf32, #tpu.memory_space<vmem>>, %arg4: memref<8x1xi32, #tpu.memory_space<vmem>>, %arg5: memref<8x1xf32, #tpu.memory_space<vmem>>, %arg6: memref<8x1xf32, #tpu.memory_space<vmem>>, %arg7: memref<8x1xf32, #tpu.memory_space<vmem>>, %arg8: memref<8x1xf32, #tpu.memory_space<vmem>>) attributes {dimension_semantics = [#tpu.dimension_semantics<parallel>, #tpu.dimension_semantics<arbitrary>], iteration_bounds = array<i64: 1, 1>, scalar_prefetch = 0 : i64, scratch_operands = 3 : i64, tpu.core_type = #tpu.core_type<tc>, window_params = [{transform_indices = @transform_0, window_bounds = array<i64: 8, 32>}, {transform_indices = @transform_1, window_bounds = array<i64: 32, 128>}, {transform_indices = @transform_2, window_bounds = array<i64: 8, 1>}, {transform_indices = @transform_3, window_bounds = array<i64: 8, 1>}]} {
    %c0_i32 = arith.constant 0 : i32
    %0 = arith.cmpi eq, %arg1, %c0_i32 : i32
    %1 = arith.extui %0 : i1 to i32
    %c0_i32_0 = arith.constant 0 : i32
    %2 = arith.cmpi ne, %1, %c0_i32_0 : i32
    scf.if %2 {
      %cst_33 = arith.constant 0xFF800000 : f32
      %65 = vector.broadcast %cst_33 : f32 to vector<8x1xf32>
      %c0_34 = arith.constant 0 : index
      %c0_35 = arith.constant 0 : index
      %66 = vector.load %arg6[%c0_34, %c0_35] : memref<8x1xf32, #tpu.memory_space<vmem>>, vector<8x1xf32>
      tpu.vector_store %arg6[%c0_34, %c0_35], %65 {strides = array<i32>} : memref<8x1xf32, #tpu.memory_space<vmem>>, vector<8x1xf32>,
      %cst_36 = arith.constant 0.000000e+00 : f32
      %67 = vector.broadcast %cst_36 : f32 to vector<8x1xf32>
      %c0_37 = arith.constant 0 : index
      %c0_38 = arith.constant 0 : index
      %68 = vector.load %arg7[%c0_37, %c0_38] : memref<8x1xf32, #tpu.memory_space<vmem>>, vector<8x1xf32>
      tpu.vector_store %arg7[%c0_37, %c0_38], %67 {strides = array<i32>} : memref<8x1xf32, #tpu.memory_space<vmem>>, vector<8x1xf32>,
      %cst_39 = arith.constant 0.000000e+00 : f32
      %69 = vector.broadcast %cst_39 : f32 to vector<8x1xf32>
      %c0_40 = arith.constant 0 : index
      %c0_41 = arith.constant 0 : index
      %70 = vector.load %arg8[%c0_40, %c0_41] : memref<8x1xf32, #tpu.memory_space<vmem>>, vector<8x1xf32>
      tpu.vector_store %arg8[%c0_40, %c0_41], %69 {strides = array<i32>} : memref<8x1xf32, #tpu.memory_space<vmem>>, vector<8x1xf32>,
    } else {
    }
    %c0 = arith.constant 0 : index
    %c0_1 = arith.constant 0 : index
    %3 = vector.load %arg2[%c0, %c0_1] : memref<8x32xf32, #tpu.memory_space<vmem>>, vector<8x32xf32>
    %c0_2 = arith.constant 0 : index
    %c0_3 = arith.constant 0 : index
    %4 = vector.load %arg3[%c0_2, %c0_3] : memref<32x128xf32, #tpu.memory_space<vmem>>, vector<32x128xf32>
    %c0_4 = arith.constant 0 : index
    %c0_5 = arith.constant 0 : index
    %5 = vector.load %arg4[%c0_4, %c0_5] : memref<8x1xi32, #tpu.memory_space<vmem>>, vector<8x1xi32>
    %cst = arith.constant dense<0.000000e+00> : vector<8x128xf32>
    %6 = tpu.matmul %3, %4, %cst {dimension_numbers = #tpu.dot_dimension_numbers<[1], [0], [0], [1], [0, 0, 1, 1], [], []>} : vector<8x32xf32>, vector<32x128xf32>, vector<8x128xf32> -> vector<8x128xf32>
    %7 = arith.mulf %3, %3 : vector<8x32xf32>
    %cst_6 = arith.constant dense<0.000000e+00> : vector<8xf32>
    %8 = vector.multi_reduction <add>, %7, %cst_6 [1] : vector<8x32xf32> to vector<8xf32>
    %9 = vector.shape_cast %8 : vector<8xf32> to vector<8x1xf32>
    %cst_7 = arith.constant 1.000000e-24 : f32
    %10 = vector.broadcast %cst_7 : f32 to vector<8x1xf32>
    %11 = arith.maximumf %9, %10 : vector<8x1xf32>
    %12 = math.rsqrt %11 : vector<8x1xf32>
    %13 = arith.mulf %4, %4 : vector<32x128xf32>
    %cst_8 = arith.constant dense<0.000000e+00> : vector<128xf32>
    %14 = vector.multi_reduction <add>, %13, %cst_8 [0] : vector<32x128xf32> to vector<128xf32>
    %15 = vector.shape_cast %14 : vector<128xf32> to vector<1x128xf32>
    %cst_9 = arith.constant 1.000000e-24 : f32
    %16 = vector.broadcast %cst_9 : f32 to vector<1x128xf32>
    %17 = arith.maximumf %15, %16 : vector<1x128xf32>
    %18 = math.rsqrt %17 : vector<1x128xf32>
    %19 = vector.broadcast %12 : vector<8x1xf32> to vector<8x128xf32>
    %20 = arith.mulf %6, %19 : vector<8x128xf32>
    %21 = vector.broadcast %18 : vector<1x128xf32> to vector<8x128xf32>
    %22 = arith.mulf %20, %21 : vector<8x128xf32>
    %c128_i32 = arith.constant 128 : i32
    %23 = arith.muli %arg1, %c128_i32 : i32
    %24 = tpu.iota {dimensions = array<i32: 1>} : vector<8x128xi32>
    %25 = vector.broadcast %23 : i32 to vector<8x128xi32>
    %26 = arith.addi %25, %24 : vector<8x128xi32>
    %27 = vector.broadcast %5 : vector<8x1xi32> to vector<8x128xi32>
    %28 = arith.cmpi eq, %26, %27 : vector<8x128xi32>
    %c10_i32 = arith.constant 10 : i32
    %29 = vector.broadcast %c10_i32 : i32 to vector<8x128xi32>
    %30 = arith.cmpi slt, %26, %29 : vector<8x128xi32>
    %cst_10 = arith.constant 3.000000e-01 : f32
    %31 = vector.broadcast %cst_10 : f32 to vector<8x128xf32>
    %32 = arith.subf %22, %31 : vector<8x128xf32>
    %33 = arith.select %28, %32, %22 : vector<8x128xi1>, vector<8x128xf32>
    %cst_11 = arith.constant 1.500000e+01 : f32
    %34 = vector.broadcast %cst_11 : f32 to vector<8x128xf32>
    %35 = arith.mulf %33, %34 : vector<8x128xf32>
    %cst_12 = arith.constant 0xFF800000 : f32
    %36 = vector.broadcast %cst_12 : f32 to vector<8x128xf32>
    %37 = arith.select %30, %35, %36 : vector<8x128xi1>, vector<8x128xf32>
    %c0_13 = arith.constant 0 : index
    %c0_14 = arith.constant 0 : index
    %38 = vector.load %arg8[%c0_13, %c0_14] : memref<8x1xf32, #tpu.memory_space<vmem>>, vector<8x1xf32>
    %cst_15 = arith.constant 0.000000e+00 : f32
    %39 = vector.broadcast %cst_15 : f32 to vector<8x128xf32>
    %40 = arith.select %28, %37, %39 : vector<8x128xi1>, vector<8x128xf32>
    %cst_16 = arith.constant dense<0.000000e+00> : vector<8xf32>
    %41 = vector.multi_reduction <add>, %40, %cst_16 [1] : vector<8x128xf32> to vector<8xf32>
    %42 = vector.shape_cast %41 : vector<8xf32> to vector<8x1xf32>
    %43 = arith.addf %38, %42 : vector<8x1xf32>
    %c0_17 = arith.constant 0 : index
    %c0_18 = arith.constant 0 : index
    %44 = vector.load %arg8[%c0_17, %c0_18] : memref<8x1xf32, #tpu.memory_space<vmem>>, vector<8x1xf32>
    tpu.vector_store %arg8[%c0_17, %c0_18], %43 {strides = array<i32>} : memref<8x1xf32, #tpu.memory_space<vmem>>, vector<8x1xf32>,
    %cst_19 = arith.constant dense<0xFF800000> : vector<8xf32>
    %45 = vector.multi_reduction <maximumf>, %37, %cst_19 [1] : vector<8x128xf32> to vector<8xf32>
    %46 = vector.shape_cast %45 : vector<8xf32> to vector<8x1xf32>
    %c0_20 = arith.constant 0 : index
    %c0_21 = arith.constant 0 : index
    %47 = vector.load %arg6[%c0_20, %c0_21] : memref<8x1xf32, #tpu.memory_space<vmem>>, vector<8x1xf32>
    %48 = arith.maximumf %47, %46 : vector<8x1xf32>
    %c0_22 = arith.constant 0 : index
    %c0_23 = arith.constant 0 : index
    %49 = vector.load %arg7[%c0_22, %c0_23] : memref<8x1xf32, #tpu.memory_space<vmem>>, vector<8x1xf32>
    %c0_24 = arith.constant 0 : index
    %c0_25 = arith.constant 0 : index
    %50 = vector.load %arg6[%c0_24, %c0_25] : memref<8x1xf32, #tpu.memory_space<vmem>>, vector<8x1xf32>
    %51 = arith.subf %50, %48 : vector<8x1xf32>
    %52 = math.exp %51 : vector<8x1xf32>
    %53 = arith.mulf %49, %52 : vector<8x1xf32>
    %54 = vector.broadcast %48 : vector<8x1xf32> to vector<8x128xf32>
    %55 = arith.subf %37, %54 : vector<8x128xf32>
    %56 = math.exp %55 : vector<8x128xf32>
    %cst_26 = arith.constant dense<0.000000e+00> : vector<8xf32>
    %57 = vector.multi_reduction <add>, %56, %cst_26 [1] : vector<8x128xf32> to vector<8xf32>
    %58 = vector.shape_cast %57 : vector<8xf32> to vector<8x1xf32>
    %59 = arith.addf %53, %58 : vector<8x1xf32>
    %c0_27 = arith.constant 0 : index
    %c0_28 = arith.constant 0 : index
    %60 = vector.load %arg7[%c0_27, %c0_28] : memref<8x1xf32, #tpu.memory_space<vmem>>, vector<8x1xf32>
    tpu.vector_store %arg7[%c0_27, %c0_28], %59 {strides = array<i32>} : memref<8x1xf32, #tpu.memory_space<vmem>>, vector<8x1xf32>,
    %c0_29 = arith.constant 0 : index
    %c0_30 = arith.constant 0 : index
    %61 = vector.load %arg6[%c0_29, %c0_30] : memref<8x1xf32, #tpu.memory_space<vmem>>, vector<8x1xf32>
    tpu.vector_store %arg6[%c0_29, %c0_30], %48 {strides = array<i32>} : memref<8x1xf32, #tpu.memory_space<vmem>>, vector<8x1xf32>,
    %c0_i32_31 = arith.constant 0 : i32
    %62 = arith.cmpi eq, %arg1, %c0_i32_31 : i32
    %63 = arith.extui %62 : i1 to i32
    %c0_i32_32 = arith.constant 0 : i32
    %64 = arith.cmpi ne, %63, %c0_i32_32 : i32
    scf.if %64 {
      %c0_33 = arith.constant 0 : index
      %c0_34 = arith.constant 0 : index
      %65 = vector.load %arg6[%c0_33, %c0_34] : memref<8x1xf32, #tpu.memory_space<vmem>>, vector<8x1xf32>
      %c0_35 = arith.constant 0 : index
      %c0_36 = arith.constant 0 : index
      %66 = vector.load %arg7[%c0_35, %c0_36] : memref<8x1xf32, #tpu.memory_space<vmem>>, vector<8x1xf32>
      %67 = math.log %66 : vector<8x1xf32>
      %68 = arith.addf %65, %67 : vector<8x1xf32>
      %c0_37 = arith.constant 0 : index
      %c0_38 = arith.constant 0 : index
      %69 = vector.load %arg8[%c0_37, %c0_38] : memref<8x1xf32, #tpu.memory_space<vmem>>, vector<8x1xf32>
      %70 = arith.subf %68, %69 : vector<8x1xf32>
      %c0_39 = arith.constant 0 : index
      %c0_40 = arith.constant 0 : index
      %71 = vector.load %arg5[%c0_39, %c0_40] : memref<8x1xf32, #tpu.memory_space<vmem>>, vector<8x1xf32>
      tpu.vector_store %arg5[%c0_39, %c0_40], %70 {strides = array<i32>} : memref<8x1xf32, #tpu.memory_space<vmem>>, vector<8x1xf32>,
    } else {
    }
    return
  }
  func.func @transform_0(%arg0: i32, %arg1: i32) -> (i32, i32) {
    %c0_i32 = arith.constant 0 : i32
    %c0_i32_0 = arith.constant 0 : i32
    return %arg0, %c0_i32 : i32, i32
  }
  func.func @transform_1(%arg0: i32, %arg1: i32) -> (i32, i32) {
    %c0_i32 = arith.constant 0 : i32
    %c0_i32_0 = arith.constant 0 : i32
    return %c0_i32, %arg1 : i32, i32
  }
  func.func @transform_2(%arg0: i32, %arg1: i32) -> (i32, i32) {
    %c0_i32 = arith.constant 0 : i32
    %c0_i32_0 = arith.constant 0 : i32
    return %arg0, %c0_i32 : i32, i32
  }
  func.func @transform_3(%arg0: i32, %arg1: i32) -> (i32, i32) {
    %c0_i32 = arith.constant 0 : i32
    %c0_i32_0 = arith.constant 0 : i32
    return %arg0, %c0_i32 : i32, i32
  }
}

</mosaic_0001>

<bundles_post_ra>
// kernel: tpu_custom_call.1
= control target key start
LH: loop header
LB: loop body
LE: loop exit
PB: predicated region body
PF: predicated region fallthrough
CT: control target
= control target key end

     0   :  { %8 = vsyncpa [#allocation6], 0  ;;  %s214_s15 = smov [#allocation5]   ;;  %s215_s17 = smov 128   ;;  %s263_s0 = inlined_call_operand.vmem [shape: f32[8,32], index: 0, kind: input, shape index: {}]   ;;  %s264_s1 = inlined_call_operand.hbm [shape: f32[32,128], index: 1, kind: input, shape index: {}]   ;;  %s265_s2 = inlined_call_operand.vmem [shape: s32[8,1], index: 2, kind: input, shape index: {}]   ;;  %s266_s3 = inlined_call_operand.vmem [shape: f32[8,1], index: 3, kind: output, shape index: {}]  }
   0x1   :  { %s15_s14 = sshll.u32 %s264_s1, 4  ;;  %s17_s16 = sshll.u32 %s214_s15, 4  ;;  %s16_s14 = int_to_ptr.hbm [resolvable:$true] %s15_s14  ;;  %s18_s16 = int_to_ptr.vmem [resolvable:$true] %s17_s16 }
   0x2   :  { %s216_s18 = smov 8  }
   0x3   :  { %23 = dma.hbm_to_vmem [thread:$0]  %s16_s14, 512, %s18_s16, [#allocation6], %s215_s17, %s215_s17, %s216_s18  }
   0x4   :  { %212 = dma.done.wait [#allocation6], 512  }
   0x5   :  { %213 = vsyncadd [#allocation6], 4294966784  ;;  %v217_v0 = vmov 0   ;;  %v38_v1 = vld [vmem:[%s263_s0] sm:$0xff]  ;;  %vm44_vm0 = vcmask 261120   ;;  %v42_v2 = vld [vmem:[#allocation5 + $0x18] sm:$0xff]  ;;  %v110_v37 = vlaneseq }
   0x6   :  { %176 = vset.pattern.permute.xlu0 %v217_v0  ;;  %177 = vset.pattern.permute.xlu1 %v217_v0  ;;  %v41_v3 = vld [vmem:[#allocation5 + $0x10] sm:$0xff]  ;;  %v68_v4 = vmul.f32 %v38_v1, %v38_v1  ;;  %v40_v5 = vld [vmem:[#allocation5 + $0x8] sm:$0xff]  ;;  %v39_v6 = vld [vmem:[#allocation5] sm:$0xff]  ;;  %v86_v11 = vmul.f32 %v42_v2, %v42_v2  ;;  %vm34_vm1 = vcmask 7168   ;;  %v218_v26 = vmov -inf  }
   0x7   :  { %60 = vmatpush.msra.mxu0 %v42_v2  ;;  %v85_v7 = vmul.f32 %v41_v3, %v41_v3  ;;  %v84_v8 = vmul.f32 %v40_v5, %v40_v5  ;;  %v83_v9 = vmul.f32 %v39_v6, %v39_v6  ;;  %v43_v15 = vld [vmem:[%s265_s2] sm:$0xff]  ;;  %35 = vst.msk [vmem:[#allocation2] sm:$0xff] %vm34_vm1, %v218_v26  ;;  %v111_v42 = vand.u32 127, %v110_v37 }
   0x8   :  { %v69_v10 = vsel %vm44_vm0, %v68_v4, 0.0  ;;  %v219_v50 = vmov 0.0  }
   0x9   :  { %61 = vmatpush.msra.mxu0 %v41_v3  ;;  %70 = vadd.xlane.f32.xlu0 %v69_v10  ;;  %v87_v12 = vadd.f32 %v84_v8, %v83_v9  ;;  %vm118_vm9 = vcmp.lt.s32.totalorder %v111_v42, 10  ;;  %36 = vst.msk [vmem:[#allocation3] sm:$0xff] %vm34_vm1, %v219_v50 }
   0xa   :  { %37 = vst.msk [vmem:[#allocation4] sm:$0xff] %vm34_vm1, %v219_v50 }
   0xb   :  { %62 = vmatpush.msra.mxu0 %v40_v5  ;;  %v88_v13 = vadd.f32 %v87_v12, %v85_v7 }
   0xd   :  { %63 = vmatpush.msra.mxu0 %v39_v6  ;;  %v89_v14 = vadd.f32 %v88_v13, %v86_v11 }
   0xe   :  { %168 = vmatmul.msk.f32.vlgmr.msra.gmra.mxu0 %vm44_vm0, %v38_v1  ;;  %v132_v51 = vld [vmem:[#allocation2] sm:$0xff] }
   0xf   :  { %v90_v16 = vrot.slane %v89_v14, 4 }
  0x10   :  { %v134_v62 = vld [vmem:[#allocation3] sm:$0xff] }
  0x11   :  { %v91_v17 = vadd.f32 %v90_v16, %v89_v14  ;;  %v123_v2 = vld [vmem:[#allocation4] sm:$0xff] }
  0x13   :  { %v92_v18 = vrot.slane %v91_v17, 2 }
  0x15   :  { %v93_v19 = vadd.f32 %v92_v18, %v91_v17 }
  0x17   :  { %v94_v20 = vrot.slane %v93_v19, 1 }
  0x19   :  { %v95_v21 = vadd.f32 %v94_v20, %v93_v19 }
  0x1b   :  { %v96_v22 = vmax.f32 %v95_v21, 1e-24 }
  0x1d   :  { %115 = vperm.xlu0 %176, %v43_v15   ;;  %178 = vrsqrt.f32 %v96_v22  ;;  %vm103_vm2 = vweird.f32 %v96_v22 }
  0x23   :  { %v179_v23 = vpop.eup %178 }
  0x24   :  { %v98_v25 = vmul.f32 %v179_v23, %v96_v22  ;;  %vm104_vm3 = vweird.f32 %v179_v23 }
  0x25   :  { %vm105_vm5 = vmor %vm103_vm2, %vm104_vm3 }
  0x26   :  { %v99_v28 = vmul.f32 %v179_v23, %v98_v25 }
  0x28   :  { %v100_v29 = vmul.f32 0.5, %v99_v28 }
  0x2a   :  { %v101_v33 = vsub.f32 1.5, %v100_v29 }
  0x2c   :  { %v102_v36 = vmul.f32 %v179_v23, %v101_v33 }
  0x2e   :  { %v106_v41 = vsel %vm105_vm5, %v179_v23, %v102_v36 }
  0x7c   :  { %v71_v24 = vpop.xlane.xlu0 %70 }
  0x7d   :  { %v72_v27 = vmax.f32 %v71_v24, 1e-24 }
  0x7f   :  { %180 = vrsqrt.f32 %v72_v27  ;;  %vm79_vm6 = vweird.f32 %v72_v27 }
  0x85   :  { %v181_v30 = vpop.eup %180 }
  0x86   :  { %v74_v31 = vmul.f32 %v181_v30, %v72_v27  ;;  %vm80_vm4 = vweird.f32 %v181_v30 }
  0x87   :  { %vm81_vm7 = vmor %vm79_vm6, %vm80_vm4 }
  0x88   :  { %v75_v32 = vmul.f32 %v181_v30, %v74_v31 }
  0x8a   :  { %v76_v34 = vmul.f32 0.5, %v75_v32 }
  0x8b   :  { %v65_v38 = vpop.f32.mrf.mxu0 }
  0x8c   :  { %v77_v35 = vsub.f32 1.5, %v76_v34 }
  0x8e   :  { %v78_v39 = vmul.f32 %v181_v30, %v77_v35 }
  0x8f   :  { %v116_v44 = vpop.permute.xlu0 %115 }
  0x90   :  { %v82_v40 = vsel %vm81_vm7, %v181_v30, %v78_v39  ;;  %vm117_vm8 = vcmp.eq.s32.totalorder %v111_v42, %v116_v44 }
  0x91   :  { %v107_v43 = vmul.f32 %v82_v40, %v65_v38 }
  0x93   :  { %v108_v45 = vmul.f32 %v107_v43, %v106_v41 }
  0x95   :  { %v169_v46 = vadd.f32 -0.3, %v108_v45 }
  0x97   :  { %v120_v47 = vsel %vm117_vm8, %v169_v46, %v108_v45 }
  0x98   :  { %v121_v48 = vmul.f32 15.0, %v120_v47 }
  0x9a   :  { %v122_v49 = vsel %vm118_vm9, %v121_v48, -inf }
  0x9b   :  { %130 = vmax.xlane.f32.xlu1 %v122_v49  ;;  %v124_v59 = vsel %vm117_vm8, %v122_v49, 0.0 }
 0x10e   :  { %v131_v52 = vpop.xlane.xlu1 %130 }
 0x10f   :  { %v133_v53 = vmax.f32 %v132_v51, %v131_v52 }
 0x111   :  { %v135_v54 = vsub.f32 %v132_v51, %v133_v53  ;;  %151 = vst.msk [vmem:[#allocation2] sm:$0xff] %vm34_vm1, %v133_v53  ;;  %141 = vperm.xlu1 %177, %v133_v53  }
 0x113   :  { %v136_v60 = vmul.f32 1.442695, %v135_v54 }
 0x118   :  { %v155_v8 = vld [vmem:[#allocation2] sm:$0xff] }
 0x183   :  { %v142_v55 = vpop.permute.xlu1 %141 }
 0x184   :  { %v144_v56 = vsub.f32 %v122_v49, %v142_v55 }
 0x186   :  { %v145_v57 = vmul.f32 1.442695, %v144_v56 }
 0x188   :  { %182 = vpow2.f32 %v145_v57 }
 0x189   :  { %184 = vpow2.f32 %v136_v60 }
 0x18e   :  { %v183_v58 = vpop.eup %182 }
 0x18f   :  { %147 = vadd.xlane.f32.xlu2 %v183_v58  ;;  %v185_v61 = vpop.eup %184 }
 0x190   :  { %v138_v63 = vmul.f32 %v185_v61, %v134_v62 }
 0x197   :  { %125 = vadd.xlane.f32.xlu2 %v124_v59 }
 0x202   :  { %v148_v0 = vpop.xlane.xlu2 %147 }
 0x203   :  { %v149_v1 = vadd.f32 %v148_v0, %v138_v63 }
 0x205   :  { %150 = vst.msk [vmem:[#allocation3] sm:$0xff] %vm34_vm1, %v149_v1 }
 0x20a   :  { %v126_v3 = vpop.xlane.xlu2 %125 }
 0x20b   :  { %v127_v4 = vadd.f32 %v126_v3, %v123_v2 }
 0x20c   :  { %v156_v5 = vld [vmem:[#allocation3] sm:$0xff] }
 0x20d   :  { %186 = vlog2.f32 %v156_v5  ;;  %129 = vst.msk [vmem:[#allocation4] sm:$0xff] %vm34_vm1, %v127_v4 }
 0x213   :  { %v187_v6 = vpop.eup %186 }
 0x214   :  { %v158_v7 = vmul.f32 0.6931472, %v187_v6  ;;  %v160_v10 = vld [vmem:[#allocation4] sm:$0xff] }
 0x216   :  { %v159_v9 = vadd.f32 %v158_v7, %v155_v8 }
 0x218   :  { %v161_v11 = vsub.f32 %v159_v9, %v160_v10 }
 0x21a   :  { %162 = vst.msk [vmem:[%s266_s3] sm:$0xff] %vm34_vm1, %v161_v11 }
 0x21b   :  { %167 = vsyncpa [#allocation6], 1 }

</bundles_post_ra>
